<compile_context>
chip_gen: v7x
topology: tpu7x:2x2x1
jax: 0.10.0
libtpu: 0.0.40
codegen_flags: <defaults>
</compile_context>

<pallas_src>
import functools

import jax
import jax.numpy as jnp
from jax.experimental import pallas as pl
from jax.experimental.pallas import tpu as pltpu

_MIB = 1024 * 1024


def _cdiv(a, b):
    return -(-a // b)


def _round_down(x, m):
    return (x // m) * m


def _device_budget():
    """Per-generation VMEM budgets (bytes): vmem_limit and per-step tile caps."""
    kind = ""
    try:
        kind = jax.devices()[0].device_kind.lower()
    except Exception:  # pragma: no cover - defensive
        pass
    if ("v5" in kind) or ("v6" in kind):
        # 128 MiB physical VMEM per TensorCore.
        return dict(vmem_limit=80 * _MIB, apply_tile=8 * _MIB,
                    stats_tile=12 * _MIB, fast_block=8 * _MIB)
    # v7x (64 MiB per TensorCore) or unknown chip: conservative caps.
    return dict(vmem_limit=44 * _MIB, apply_tile=5 * _MIB,
                stats_tile=8 * _MIB, fast_block=5 * _MIB)


def _pick_c_tile(C, max_ct=512):
    """Sublane-aligned channel tile; exposes >=2 parallel C tiles when C>=16."""
    if C < 8:
        return C                      # full-dim exception (tiny, sublane-masked)
    ct = min(_round_down(max_ct, 8), _round_down(C, 8))
    if C >= 16 and _cdiv(C, ct) < 2:  # keep both v7x TensorCores busy in pass 1
        ct = max(8, _round_down((C + 1) // 2, 8))
    return ct


def _pick_hw_tile(HW, c_t, itemsize, max_bytes):
    """Lane-dense (multiple-of-128) HW tile bounded by max_bytes per x block."""
    max_cols = max(128, _round_down(max_bytes // max(1, c_t * itemsize), 128))
    if HW < 128:
        return HW                     # full-dim exception (bounded & small)
    if HW % 128 == 0:                 # pick an exact divisor -> no masking
        t = min(max_cols, HW)
        while HW % t != 0:
            t -= 128
        return t
    return min(max_cols, _round_down(HW, 128))   # cdiv grid + masked tail


# ---------------------------------------------------------------------------
# Fast path: single read of x, stats + apply + EMA fused in one pallas_call.
# Grid: (C_tiles,) fully parallel; each step owns (N, C_t, HW).
# ---------------------------------------------------------------------------
def _bn_fast_kernel(x_ref, gain_ref, bias_ref, sm_ref, sv_ref,
                    out_ref, nm_ref, nv_ref,
                    *, inv_count, eps, momentum):
    x = x_ref[...].astype(jnp.float32)              # (N, C_t, HW) f32
    s = jnp.sum(jnp.sum(x, axis=-1, keepdims=True), axis=0)        # (C_t, 1)
    sq = jnp.sum(jnp.sum(x * x, axis=-1, keepdims=True), axis=0)   # (C_t, 1)

    m = s * inv_count                               # (C_t, 1) f32
    v = sq * inv_count - m * m                      # (C_t, 1) f32
    istd = jax.lax.rsqrt(v + eps)                   # (C_t, 1) f32 (EUP)

    g = gain_ref[...].astype(jnp.float32)           # (N, C_t, 1)
    b = bias_ref[...].astype(jnp.float32)           # (N, C_t, 1)
    scale = istd[None] * g                          # (N, C_t, 1)
    shift = m[None] * scale - b                     # (N, C_t, 1)

    out_ref[...] = (x * scale - shift).astype(out_ref.dtype)

    sm = sm_ref[...].astype(jnp.float32)            # (C_t, 1)
    sv = sv_ref[...].astype(jnp.float32)
    nm_ref[...] = (sm * (1.0 - momentum) + m * momentum).astype(nm_ref.dtype)
    nv_ref[...] = (sv * (1.0 - momentum) + v * momentum).astype(nv_ref.dtype)


# ---------------------------------------------------------------------------
# Two-pass path, pass 1: per-channel sum / sum-sq -> mean, inv_std, EMA stats.
# Grid: (C_tiles, N, HW_tiles) with the reductions innermost.
# ---------------------------------------------------------------------------
def _bn_stats_kernel(x_ref, sm_ref, sv_ref,
                     mean_ref, invstd_ref, nm_ref, nv_ref,
                     sum_acc, sq_acc,
                     *, inv_count, eps, momentum, hw, hw_t, mask_hw):
    n = pl.program_id(1)
    h = pl.program_id(2)
    is_first = jnp.logical_and(n == 0, h == 0)
    is_last = jnp.logical_and(n == pl.num_programs(1) - 1,
                              h == pl.num_programs(2) - 1)

    @pl.when(is_first)
    def _():
        sum_acc[...] = jnp.zeros_like(sum_acc)
        sq_acc[...] = jnp.zeros_like(sq_acc)

    x = x_ref[0].astype(jnp.float32)                # (C_t, HW_t) f32
    if mask_hw:                                     # padded lane tail -> zero it
        col = h * hw_t + jax.lax.broadcasted_iota(jnp.int32, x.shape, 1)
        x = jnp.where(col < hw, x, 0.0)
    sum_acc[...] += jnp.sum(x, axis=-1, keepdims=True)      # lane reduce (XLU)
    sq_acc[...] += jnp.sum(x * x, axis=-1, keepdims=True)

    @pl.when(is_last)
    def _():
        m = sum_acc[...] * inv_count
        v = sq_acc[...] * inv_count - m * m
        mean_ref[...] = m
        invstd_ref[...] = jax.lax.rsqrt(v + eps)
        sm = sm_ref[...].astype(jnp.float32)
        sv = sv_ref[...].astype(jnp.float32)
        nm_ref[...] = (sm * (1.0 - momentum) + m * momentum).astype(nm_ref.dtype)
        nv_ref[...] = (sv * (1.0 - momentum) + v * momentum).astype(nv_ref.dtype)


# ---------------------------------------------------------------------------
# Two-pass path, pass 2: out = x * scale - shift   (fully parallel grid)
# ---------------------------------------------------------------------------
def _bn_apply_kernel(mean_ref, invstd_ref, gain_ref, bias_ref, x_ref, out_ref):
    m = mean_ref[...]                               # (C_t, 1) f32
    istd = invstd_ref[...]                          # (C_t, 1) f32
    g = gain_ref[0].astype(jnp.float32)             # (C_t, 1) f32
    b = bias_ref[0].astype(jnp.float32)             # (C_t, 1) f32

    scale = istd * g
    shift = m * scale - b

    # Apply in f32; cast only at the store (free: pass is HBM-bound).
    x = x_ref[0].astype(jnp.float32)                # (C_t, HW_t) f32
    out_ref[0] = (x * scale - shift).astype(out_ref.dtype)


# ---------------------------------------------------------------------------
# Wrapper
# ---------------------------------------------------------------------------
def my_bn_forward(x_nchw, gain, bias, stored_mean, stored_var,
                  eps=1e-5, momentum=0.1, force_path=None):
    """Training-mode forward of myBN.

    Args:
      x_nchw:      (N, C, H, W)
      gain, bias:  (N, C, 1, 1)  (broadcast like PyTorch fused_bn)
      stored_mean: (C,)  running mean buffer
      stored_var:  (C,)  running var buffer
      force_path:  None (auto) | "fast" | "two_pass"  (testing hook)
    Returns:
      out (N, C, H, W), new_stored_mean (C,), new_stored_var (C,)
    """
    N, C, H, W = x_nchw.shape
    HW = H * W
    itemsize = jnp.dtype(x_nchw.dtype).itemsize
    inv_count = 1.0 / float(N * HW)

    # Free reshapes only (contiguous trailing dims merged): no transposes.
    x = x_nchw.reshape(N, C, HW)
    g = gain.reshape(N, C, 1)
    b = bias.reshape(N, C, 1)
    sm = stored_mean.reshape(C, 1)
    sv = stored_var.reshape(C, 1)

    budget = _device_budget()
    C_t = _pick_c_tile(C)
    nc = _cdiv(C, C_t)

    # ---- fast path feasibility (account for lane padding in VMEM) ----
    hw_pad = max(128, _cdiv(HW, 128) * 128)
    row_bytes = N * hw_pad * itemsize               # one channel row, padded
    min_ct = C if C < 8 else 8
    fast_ok = row_bytes * min_ct <= budget["fast_block"]
    if force_path == "fast":
        use_fast = True
    elif force_path == "two_pass":
        use_fast = False
    else:
        use_fast = fast_ok

    if use_fast:
        if C < 8:
            C_t_fast = C
        else:
            C_t_fast = max(8, min(C_t, _round_down(
                budget["fast_block"] // row_bytes, 8)))
        nc_fast = _cdiv(C, C_t_fast)

        out, new_mean, new_var = pl.pallas_call(
            functools.partial(_bn_fast_kernel, inv_count=inv_count, eps=eps,
                              momentum=momentum),
            out_shape=(
                jax.ShapeDtypeStruct((N, C, HW), x_nchw.dtype),
                jax.ShapeDtypeStruct((C, 1), stored_mean.dtype),
                jax.ShapeDtypeStruct((C, 1), stored_var.dtype),
            ),
            grid=(nc_fast,),
            in_specs=[
                pl.BlockSpec((N, C_t_fast, HW), lambda c: (0, c, 0)),
                pl.BlockSpec((N, C_t_fast, 1), lambda c: (0, c, 0)),
                pl.BlockSpec((N, C_t_fast, 1), lambda c: (0, c, 0)),
                pl.BlockSpec((C_t_fast, 1), lambda c: (c, 0)),
                pl.BlockSpec((C_t_fast, 1), lambda c: (c, 0)),
            ],
            out_specs=(
                pl.BlockSpec((N, C_t_fast, HW), lambda c: (0, c, 0)),
                pl.BlockSpec((C_t_fast, 1), lambda c: (c, 0)),
                pl.BlockSpec((C_t_fast, 1), lambda c: (c, 0)),
            ),
            compiler_params=pltpu.CompilerParams(
                dimension_semantics=("parallel",),
                vmem_limit_bytes=budget["vmem_limit"]),
        )(x, g, b, sm, sv)

        return (out.reshape(N, C, H, W),
                new_mean.reshape(C), new_var.reshape(C))

    # ---- two-pass path: tiles decoupled per pass ----
    HW_t_s = _pick_hw_tile(HW, C_t, itemsize, budget["stats_tile"])
    HW_t_a = _pick_hw_tile(HW, C_t, itemsize, budget["apply_tile"])
    nhw_s = _cdiv(HW, HW_t_s)
    nhw_a = _cdiv(HW, HW_t_a)
    mask_hw_s = (HW % HW_t_s) != 0

    # -------- pass 1: stats + inv_std + running-stat EMA --------
    mean_c1, invstd_c1, new_mean, new_var = pl.pallas_call(
        functools.partial(_bn_stats_kernel, inv_count=inv_count, eps=eps,
                          momentum=momentum, hw=HW, hw_t=HW_t_s,
                          mask_hw=mask_hw_s),
        out_shape=(
            jax.ShapeDtypeStruct((C, 1), jnp.float32),
            jax.ShapeDtypeStruct((C, 1), jnp.float32),
            jax.ShapeDtypeStruct((C, 1), stored_mean.dtype),
            jax.ShapeDtypeStruct((C, 1), stored_var.dtype),
        ),
        grid=(nc, N, nhw_s),
        in_specs=[
            pl.BlockSpec((1, C_t, HW_t_s), lambda c, n, h: (n, c, h)),
            pl.BlockSpec((C_t, 1), lambda c, n, h: (c, 0)),
            pl.BlockSpec((C_t, 1), lambda c, n, h: (c, 0)),
        ],
        out_specs=(
            pl.BlockSpec((C_t, 1), lambda c, n, h: (c, 0)),
            pl.BlockSpec((C_t, 1), lambda c, n, h: (c, 0)),
            pl.BlockSpec((C_t, 1), lambda c, n, h: (c, 0)),
            pl.BlockSpec((C_t, 1), lambda c, n, h: (c, 0)),
        ),
        scratch_shapes=[
            pltpu.VMEM((C_t, 1), jnp.float32),
            pltpu.VMEM((C_t, 1), jnp.float32),
        ],
        compiler_params=pltpu.CompilerParams(
            dimension_semantics=("parallel", "arbitrary", "arbitrary"),
            vmem_limit_bytes=budget["vmem_limit"]),
    )(x, sm, sv)

    # -------- pass 2: apply --------
    out = pl.pallas_call(
        _bn_apply_kernel,
        out_shape=jax.ShapeDtypeStruct((N, C, HW), x_nchw.dtype),
        grid=(nc, N, nhw_a),
        in_specs=[
            pl.BlockSpec((C_t, 1), lambda c, n, h: (c, 0)),        # mean
            pl.BlockSpec((C_t, 1), lambda c, n, h: (c, 0)),        # inv_std
            pl.BlockSpec((1, C_t, 1), lambda c, n, h: (n, c, 0)),  # gain
            pl.BlockSpec((1, C_t, 1), lambda c, n, h: (n, c, 0)),  # bias
            pl.BlockSpec((1, C_t, HW_t_a), lambda c, n, h: (n, c, h)),
        ],
        out_specs=pl.BlockSpec((1, C_t, HW_t_a), lambda c, n, h: (n, c, h)),
        compiler_params=pltpu.CompilerParams(
            dimension_semantics=("parallel", "parallel", "parallel"),
            vmem_limit_bytes=budget["vmem_limit"]),
    )(mean_c1, invstd_c1, g, b, x)

    return (out.reshape(N, C, H, W),
            new_mean.reshape(C), new_var.reshape(C))


def _reference(x, gain, bias, eps=1e-5):
    """Pure-JAX reference of manual_bn (for a silent correctness check)."""
    xf = x.astype(jnp.float32)
    m = jnp.mean(xf, axis=(0, 2, 3), keepdims=True)
    m2 = jnp.mean(xf ** 2, axis=(0, 2, 3), keepdims=True)
    var = m2 - m ** 2
    scale = jax.lax.rsqrt(var + eps) * gain
    shift = m * scale - bias
    return xf * scale - shift, m.reshape(-1), var.reshape(-1)


if __name__ == "__main__":
    key = jax.random.PRNGKey(0)
    kx, kg, kb = jax.random.split(key, 3)

    N, C, H, W = 2, 4, 16, 16
    x = jax.random.normal(kx, (N, C, H, W), dtype=jnp.float32) * 2.0 + 0.5
    # Conditional gain/bias as used with myBN (per-sample, per-channel).
    gain = 1.0 + 0.1 * jax.random.normal(kg, (N, C, 1, 1), dtype=jnp.float32)
    bias = 0.1 * jax.random.normal(kb, (N, C, 1, 1), dtype=jnp.float32)

    # Deterministic buffer init, as in __init__.
    stored_mean = jnp.zeros((C,), dtype=jnp.float32)
    stored_var = jnp.ones((C,), dtype=jnp.float32)

    fwd = jax.jit(my_bn_forward,
                  static_argnames=("eps", "momentum", "force_path"))

    # Fast single-read path (whole activation fits in VMEM at this shape).
    out, new_mean, new_var = fwd(x, gain, bias, stored_mean, stored_var)
    jax.block_until_ready((out, new_mean, new_var))

    ref_out, ref_m, ref_v = _reference(x, gain, bias)
    assert jnp.allclose(out, ref_out, atol=1e-4, rtol=1e-4)
    assert jnp.allclose(new_mean, stored_mean * 0.9 + ref_m * 0.1, atol=1e-5)
    assert jnp.allclose(new_var, stored_var * 0.9 + ref_v * 0.1, atol=1e-5)

    # Also exercise the tiled two-pass path (used for large activations).
    out2, nm2, nv2 = fwd(x, gain, bias, stored_mean, stored_var,
                         force_path="two_pass")
    jax.block_until_ready((out2, nm2, nv2))
    assert jnp.allclose(out2, ref_out, atol=1e-4, rtol=1e-4)
    assert jnp.allclose(nm2, stored_mean * 0.9 + ref_m * 0.1, atol=1e-5)
    assert jnp.allclose(nv2, stored_var * 0.9 + ref_v * 0.1, atol=1e-5)

    print("KERNEL_OK")
</pallas_src>

<mosaic_0001>
module attributes {stable_mosaic.version = 11 : i64} {
  func.func @_bn_fast_kernel(%arg0: i32, %arg1: memref<2x4x256xf32, #tpu.memory_space<vmem>>, %arg2: memref<2x4x1xf32, #tpu.memory_space<vmem>>, %arg3: memref<2x4x1xf32, #tpu.memory_space<vmem>>, %arg4: memref<4x1xf32, #tpu.memory_space<vmem>>, %arg5: memref<4x1xf32, #tpu.memory_space<vmem>>, %arg6: memref<2x4x256xf32, #tpu.memory_space<vmem>>, %arg7: memref<4x1xf32, #tpu.memory_space<vmem>>, %arg8: memref<4x1xf32, #tpu.memory_space<vmem>>) attributes {dimension_semantics = [#tpu.dimension_semantics<parallel>], iteration_bounds = array<i64: 1>, scalar_prefetch = 0 : i64, scratch_operands = 0 : i64, tpu.core_type = #tpu.core_type<tc>, window_params = [{transform_indices = @transform_0, window_bounds = array<i64: 2, 4, 256>}, {transform_indices = @transform_1, window_bounds = array<i64: 2, 4, 1>}, {transform_indices = @transform_2, window_bounds = array<i64: 2, 4, 1>}, {transform_indices = @transform_3, window_bounds = array<i64: 4, 1>}, {transform_indices = @transform_4, window_bounds = array<i64: 4, 1>}, {transform_indices = @transform_5, window_bounds = array<i64: 2, 4, 256>}, {transform_indices = @transform_6, window_bounds = array<i64: 4, 1>}, {transform_indices = @transform_7, window_bounds = array<i64: 4, 1>}]} {
    %c0 = arith.constant 0 : index
    %c0_0 = arith.constant 0 : index
    %c0_1 = arith.constant 0 : index
    %0 = vector.load %arg1[%c0, %c0_0, %c0_1] : memref<2x4x256xf32, #tpu.memory_space<vmem>>, vector<2x4x256xf32>
    %cst = arith.constant dense<0.000000e+00> : vector<2x4xf32>
    %1 = vector.multi_reduction <add>, %0, %cst [2] : vector<2x4x256xf32> to vector<2x4xf32>
    %2 = vector.shape_cast %1 : vector<2x4xf32> to vector<2x4x1xf32>
    %cst_2 = arith.constant dense<0.000000e+00> : vector<4x1xf32>
    %3 = vector.multi_reduction <add>, %2, %cst_2 [0] : vector<2x4x1xf32> to vector<4x1xf32>
    %4 = arith.mulf %0, %0 : vector<2x4x256xf32>
    %cst_3 = arith.constant dense<0.000000e+00> : vector<2x4xf32>
    %5 = vector.multi_reduction <add>, %4, %cst_3 [2] : vector<2x4x256xf32> to vector<2x4xf32>
    %6 = vector.shape_cast %5 : vector<2x4xf32> to vector<2x4x1xf32>
    %cst_4 = arith.constant dense<0.000000e+00> : vector<4x1xf32>
    %7 = vector.multi_reduction <add>, %6, %cst_4 [0] : vector<2x4x1xf32> to vector<4x1xf32>
    %cst_5 = arith.constant 0.001953125 : f32
    %8 = vector.broadcast %cst_5 : f32 to vector<4x1xf32>
    %9 = arith.mulf %3, %8 : vector<4x1xf32>
    %cst_6 = arith.constant 0.001953125 : f32
    %10 = vector.broadcast %cst_6 : f32 to vector<4x1xf32>
    %11 = arith.mulf %7, %10 : vector<4x1xf32>
    %12 = arith.mulf %9, %9 : vector<4x1xf32>
    %13 = arith.subf %11, %12 : vector<4x1xf32>
    %cst_7 = arith.constant 9.99999974E-6 : f32
    %14 = vector.broadcast %cst_7 : f32 to vector<4x1xf32>
    %15 = arith.addf %13, %14 : vector<4x1xf32>
    %16 = math.rsqrt %15 : vector<4x1xf32>
    %c0_8 = arith.constant 0 : index
    %c0_9 = arith.constant 0 : index
    %c0_10 = arith.constant 0 : index
    %17 = vector.load %arg2[%c0_8, %c0_9, %c0_10] : memref<2x4x1xf32, #tpu.memory_space<vmem>>, vector<2x4x1xf32>
    %c0_11 = arith.constant 0 : index
    %c0_12 = arith.constant 0 : index
    %c0_13 = arith.constant 0 : index
    %18 = vector.load %arg3[%c0_11, %c0_12, %c0_13] : memref<2x4x1xf32, #tpu.memory_space<vmem>>, vector<2x4x1xf32>
    %19 = vector.shape_cast %16 : vector<4x1xf32> to vector<1x4x1xf32>
    %20 = vector.broadcast %19 : vector<1x4x1xf32> to vector<2x4x1xf32>
    %21 = arith.mulf %20, %17 : vector<2x4x1xf32>
    %22 = vector.shape_cast %9 : vector<4x1xf32> to vector<1x4x1xf32>
    %23 = vector.broadcast %22 : vector<1x4x1xf32> to vector<2x4x1xf32>
    %24 = arith.mulf %23, %21 : vector<2x4x1xf32>
    %25 = arith.subf %24, %18 : vector<2x4x1xf32>
    %26 = vector.broadcast %21 : vector<2x4x1xf32> to vector<2x4x256xf32>
    %27 = arith.mulf %0, %26 : vector<2x4x256xf32>
    %28 = vector.broadcast %25 : vector<2x4x1xf32> to vector<2x4x256xf32>
    %29 = arith.subf %27, %28 : vector<2x4x256xf32>
    %c0_14 = arith.constant 0 : index
    %c0_15 = arith.constant 0 : index
    %c0_16 = arith.constant 0 : index
    %30 = vector.load %arg6[%c0_14, %c0_15, %c0_16] : memref<2x4x256xf32, #tpu.memory_space<vmem>>, vector<2x4x256xf32>
    tpu.vector_store %arg6[%c0_14, %c0_15, %c0_16], %29 {strides = array<i32>} : memref<2x4x256xf32, #tpu.memory_space<vmem>>, vector<2x4x256xf32>,
    %c0_17 = arith.constant 0 : index
    %c0_18 = arith.constant 0 : index
    %31 = vector.load %arg4[%c0_17, %c0_18] : memref<4x1xf32, #tpu.memory_space<vmem>>, vector<4x1xf32>
    %c0_19 = arith.constant 0 : index
    %c0_20 = arith.constant 0 : index
    %32 = vector.load %arg5[%c0_19, %c0_20] : memref<4x1xf32, #tpu.memory_space<vmem>>, vector<4x1xf32>
    %cst_21 = arith.constant 0.899999976 : f32
    %33 = vector.broadcast %cst_21 : f32 to vector<4x1xf32>
    %34 = arith.mulf %31, %33 : vector<4x1xf32>
    %cst_22 = arith.constant 1.000000e-01 : f32
    %35 = vector.broadcast %cst_22 : f32 to vector<4x1xf32>
    %36 = arith.mulf %9, %35 : vector<4x1xf32>
    %37 = arith.addf %34, %36 : vector<4x1xf32>
    %c0_23 = arith.constant 0 : index
    %c0_24 = arith.constant 0 : index
    %38 = vector.load %arg7[%c0_23, %c0_24] : memref<4x1xf32, #tpu.memory_space<vmem>>, vector<4x1xf32>
    tpu.vector_store %arg7[%c0_23, %c0_24], %37 {strides = array<i32>} : memref<4x1xf32, #tpu.memory_space<vmem>>, vector<4x1xf32>,
    %cst_25 = arith.constant 0.899999976 : f32
    %39 = vector.broadcast %cst_25 : f32 to vector<4x1xf32>
    %40 = arith.mulf %32, %39 : vector<4x1xf32>
    %cst_26 = arith.constant 1.000000e-01 : f32
    %41 = vector.broadcast %cst_26 : f32 to vector<4x1xf32>
    %42 = arith.mulf %13, %41 : vector<4x1xf32>
    %43 = arith.addf %40, %42 : vector<4x1xf32>
    %c0_27 = arith.constant 0 : index
    %c0_28 = arith.constant 0 : index
    %44 = vector.load %arg8[%c0_27, %c0_28] : memref<4x1xf32, #tpu.memory_space<vmem>>, vector<4x1xf32>
    tpu.vector_store %arg8[%c0_27, %c0_28], %43 {strides = array<i32>} : memref<4x1xf32, #tpu.memory_space<vmem>>, vector<4x1xf32>,
    return
  }
  func.func @transform_0(%arg0: i32) -> (i32, i32, i32) {
    %c0_i32 = arith.constant 0 : i32
    %c0_i32_0 = arith.constant 0 : i32
    %c0_i32_1 = arith.constant 0 : i32
    return %c0_i32, %arg0, %c0_i32_0 : i32, i32, i32
  }
  func.func @transform_1(%arg0: i32) -> (i32, i32, i32) {
    %c0_i32 = arith.constant 0 : i32
    %c0_i32_0 = arith.constant 0 : i32
    %c0_i32_1 = arith.constant 0 : i32
    return %c0_i32, %arg0, %c0_i32_0 : i32, i32, i32
  }
  func.func @transform_2(%arg0: i32) -> (i32, i32, i32) {
    %c0_i32 = arith.constant 0 : i32
    %c0_i32_0 = arith.constant 0 : i32
    %c0_i32_1 = arith.constant 0 : i32
    return %c0_i32, %arg0, %c0_i32_0 : i32, i32, i32
  }
  func.func @transform_3(%arg0: i32) -> (i32, i32) {
    %c0_i32 = arith.constant 0 : i32
    %c0_i32_0 = arith.constant 0 : i32
    return %arg0, %c0_i32 : i32, i32
  }
  func.func @transform_4(%arg0: i32) -> (i32, i32) {
    %c0_i32 = arith.constant 0 : i32
    %c0_i32_0 = arith.constant 0 : i32
    return %arg0, %c0_i32 : i32, i32
  }
  func.func @transform_5(%arg0: i32) -> (i32, i32, i32) {
    %c0_i32 = arith.constant 0 : i32
    %c0_i32_0 = arith.constant 0 : i32
    %c0_i32_1 = arith.constant 0 : i32
    return %c0_i32, %arg0, %c0_i32_0 : i32, i32, i32
  }
  func.func @transform_6(%arg0: i32) -> (i32, i32) {
    %c0_i32 = arith.constant 0 : i32
    %c0_i32_0 = arith.constant 0 : i32
    return %arg0, %c0_i32 : i32, i32
  }
  func.func @transform_7(%arg0: i32) -> (i32, i32) {
    %c0_i32 = arith.constant 0 : i32
    %c0_i32_0 = arith.constant 0 : i32
    return %arg0, %c0_i32 : i32, i32
  }
}

</mosaic_0001>

<bundles_post_ra>
// kernel: my_bn_forward.1
= control target key start
LH: loop header
LB: loop body
LE: loop exit
PB: predicated region body
PF: predicated region fallthrough
CT: control target
= control target key end

     0   :  { %vm31_vm0 = vcmask 1043456   ;;  %v167_v20 = vmov 0   ;;  %vm141_vm1 = vcmask 3072   ;;  %v168_v55 = vmov 839922192   ;;  %s273_s0 = inlined_call_operand.vmem [shape: f32[2,4,256], index: 0, kind: input, shape index: {}]   ;;  %s274_s3 = inlined_call_operand.vmem [shape: f32[4,1], index: 3, kind: input, shape index: {}]   ;;  %s275_s4 = inlined_call_operand.vmem [shape: f32[4,1], index: 4, kind: input, shape index: {}]   ;;  %s276_s6 = inlined_call_operand.vmem [shape: f32[4,1], index: 6, kind: output, shape index: {1}]   ;;  %s277_s7 = inlined_call_operand.vmem [shape: f32[4,1], index: 7, kind: output, shape index: {2}]   ;;  %s278_s1 = inlined_call_operand.vmem [shape: f32[2,4,1], index: 1, kind: input, shape index: {}]   ;;  %s279_s2 = inlined_call_operand.vmem [shape: f32[2,4,1], index: 2, kind: input, shape index: {}]   ;;  %s280_s5 = inlined_call_operand.vmem [shape: f32[2,4,256], index: 5, kind: output, shape index: {0}]  }
   0x1   :  { %v212_v0 = vld [vmem:[%s273_s0] sm:$0xff]  ;;  %v217_v1 = vld [vmem:[%s273_s0 + $0x8] sm:$0xff]  ;;  %162 = vset.pattern.permute.xlu1 %v167_v20  ;;  %161 = vset.pattern.permute.xlu0 %v167_v20  ;;  %v91_v56 = vunpack.c.l.s4 %v168_v55  ;;  %v93_v57 = vlaneseq }
   0x2   :  { %v27_v2 = vcombine.high %v212_v0, %v212_v0  ;;  %v32_v3 = vsel %vm31_vm0, %v212_v0, 0.0  ;;  %v45_v4 = vmul.f32 %v212_v0, %v212_v0  ;;  %v28_v5 = vcombine.high %v217_v1, %v217_v1  ;;  %v136_v25 = vld [vmem:[%s274_s3] sm:$0xf]  ;;  %v73_v44 = vld [vmem:[%s278_s1 + $0x4] sm:$0xf] }
   0x3   :  { %v37_v6 = vsel %vm31_vm0, %v217_v1, 0.0  ;;  %v46_v7 = vmul.f32 %v217_v1, %v217_v1  ;;  %v138_v31 = vmul.f32 0.9, %v136_v25  ;;  %v137_v34 = vld [vmem:[%s275_s4] sm:$0xf]  ;;  %v92_v58 = vunpack.c.0.s8 %v91_v56 }
   0x4   :  { %v33_v8 = vsel %vm31_vm0, %v27_v2, 0.0  ;;  %v49_v9 = vcombine.high %v45_v4, %v45_v4  ;;  %v53_v10 = vsel %vm31_vm0, %v45_v4, 0.0  ;;  %v38_v11 = vsel %vm31_vm0, %v28_v5, 0.0  ;;  %v72_v45 = vld [vmem:[%s278_s1] sm:$0xf] }
   0x5   :  { %v34_v12 = vadd.f32 %v33_v8, %v32_v3  ;;  %v50_v13 = vcombine.high %v46_v7, %v46_v7  ;;  %v58_v15 = vsel %vm31_vm0, %v46_v7, 0.0  ;;  %v39_v17 = vadd.f32 %v38_v11, %v37_v6  ;;  %v74_v49 = vld [vmem:[%s279_s2] sm:$0xf]  ;;  %v75_v53 = vld [vmem:[%s279_s2 + $0x4] sm:$0xf] }
   0x6   :  { %v54_v14 = vsel %vm31_vm0, %v49_v9, 0.0  ;;  %v143_v39 = vmul.f32 0.9, %v137_v34  ;;  %v94_v59 = vshrl.u32 %v93_v57, 7 }
   0x7   :  { %35 = vadd.xlane.f32.xlu0 %v34_v12  ;;  %v55_v16 = vadd.f32 %v54_v14, %v53_v10  ;;  %v59_v18 = vsel %vm31_vm0, %v50_v13, 0.0 }
   0x8   :  { %v60_v19 = vadd.f32 %v59_v18, %v58_v15  ;;  %v95_v60 = vsub.s32 %v92_v58, %v94_v59 }
   0x9   :  { %56 = vadd.xlane.f32.xlu1 %v55_v16 }
   0xb   :  { %40 = vadd.xlane.f32.xlu0 %v39_v17 }
   0xd   :  { %61 = vadd.xlane.f32.xlu1 %v60_v19 }
  0x94   :  { %v36_v21 = vpop.xlane.xlu0 %35 }
  0x95   :  { %v42_v24 = vsel %vm31_vm0, %v36_v21, 0.0 }
  0x96   :  { %v57_v22 = vpop.xlane.xlu1 %56 }
  0x97   :  { %v63_v29 = vsel %vm31_vm0, %v57_v22, 0.0 }
  0x98   :  { %v41_v23 = vpop.xlane.xlu0 %40 }
  0x99   :  { %v43_v26 = vsel %vm31_vm0, %v41_v23, 0.0 }
  0x9a   :  { %v44_v27 = vadd.f32 %v43_v26, %v42_v24  ;;  %v62_v28 = vpop.xlane.xlu1 %61 }
  0x9b   :  { %v64_v30 = vsel %vm31_vm0, %v62_v28, 0.0 }
  0x9c   :  { %v66_v32 = vmul.f32 0.001953125, %v44_v27  ;;  %v65_v33 = vadd.f32 %v64_v30, %v63_v29 }
  0x9e   :  { %v139_v35 = vmul.f32 0.1, %v66_v32  ;;  %v67_v36 = vmul.f32 0.001953125, %v65_v33  ;;  %v68_v37 = vmul.f32 %v66_v32, %v66_v32 }
  0xa0   :  { %v140_v38 = vadd.f32 %v139_v35, %v138_v31  ;;  %v69_v40 = vsub.f32 %v67_v36, %v68_v37 }
  0xa2   :  { %v70_v41 = vadd.f32 1e-05, %v69_v40  ;;  %142 = vst.msk [vmem:[%s276_s6] sm:$0xf] %vm141_vm1, %v140_v38  ;;  %v144_v42 = vmul.f32 0.1, %v69_v40 }
  0xa4   :  { %165 = vrsqrt.f32 %v70_v41  ;;  %v145_v43 = vadd.f32 %v144_v42, %v143_v39 }
  0xa6   :  { %146 = vst.msk [vmem:[%s277_s7] sm:$0xf] %vm141_vm1, %v145_v43 }
  0xae   :  { %v166_v46 = vpop.eup %165 }
  0xaf   :  { %v77_v47 = vmul.f32 %v166_v46, %v73_v44  ;;  %v76_v48 = vmul.f32 %v166_v46, %v72_v45 }
  0xb1   :  { %88 = vperm.xlu1 %162, %v77_v47   ;;  %84 = vperm.xlu0 %161, %v76_v48   ;;  %v78_v50 = vmul.f32 %v76_v48, %v66_v32  ;;  %v79_v52 = vmul.f32 %v77_v47, %v66_v32 }
  0xb3   :  { %v80_v51 = vsub.f32 %v78_v50, %v74_v49  ;;  %v81_v54 = vsub.f32 %v79_v52, %v75_v53 }
  0xb5   :  { %110 = vperm.xlu1 %162, %v80_v51  }
  0xb9   :  { %114 = vperm.xlu1 %162, %v81_v54  }
 0x130   :  { %v89_v61 = vpop.permute.xlu1 %88  ;;  %v85_v62 = vpop.permute.xlu0 %84 }
 0x131   :  { %v96_v63 = vrot.slane %v85_v62, %v95_v60  ;;  %v103_v3 = vrot.slane %v89_v61, %v95_v60 }
 0x133   :  { %v106_v4 = vmul.f32 %v96_v63, %v212_v0  ;;  %v107_v8 = vmul.f32 %v103_v3, %v217_v1 }
 0x134   :  { %v111_v2 = vpop.permute.xlu1 %110 }
 0x135   :  { %v122_v5 = vrot.slane %v111_v2, %v95_v60 }
 0x137   :  { %v132_v6 = vsub.f32 %v106_v4, %v122_v5 }
 0x138   :  { %v115_v7 = vpop.permute.xlu1 %114 }
 0x139   :  { %134 = vst [vmem:[%s280_s5] sm:$0xff] %v132_v6  ;;  %v129_v9 = vrot.slane %v115_v7, %v95_v60 }
 0x13b   :  { %v133_v10 = vsub.f32 %v107_v8, %v129_v9 }
 0x13d   :  { %135 = vst [vmem:[%s280_s5 + $0x8] sm:$0xff] %v133_v10 }

</bundles_post_ra>
